<compile_context>
chip_gen: v7x
topology: tpu7x:2x2x1
jax: 0.10.0
libtpu: 0.0.40
codegen_flags: <defaults>
</compile_context>

<pallas_src>
import math
from functools import partial

import jax
import jax.numpy as jnp
from jax import lax
from jax.experimental import pallas as pl
from jax.experimental.pallas import tpu as pltpu


# ---------------------------------------------------------------------------
# Kernel 1: fused 1x1-conv projection (channel matmul) + positional embedding,
# grid = (3 images, B) -- weights/pos stay resident across the whole grid.
# ---------------------------------------------------------------------------
def _proj_pos_kernel(feat_ref, wp_ref, bp_ref, pos_ref, out_ref):
    # feat_ref: [S, Cin] f32, wp: [Cin, D] bf16, bp: [1, D] f32, pos: [S, D] f32
    x = feat_ref[...].astype(jnp.bfloat16)
    y = jnp.dot(x, wp_ref[...], preferred_element_type=jnp.float32)
    out_ref[...] = y + bp_ref[...] + pos_ref[...]


def project_and_add_pos(feat_stack, wp_bf16, bp, pos):
    N, B, S, Cin = feat_stack.shape
    D = wp_bf16.shape[1]
    return pl.pallas_call(
        _proj_pos_kernel,
        out_shape=jax.ShapeDtypeStruct((N, B, S, D), jnp.float32),
        grid=(N, B),
        in_specs=[
            pl.BlockSpec((None, None, S, Cin), lambda n, b: (n, b, 0, 0)),
            pl.BlockSpec((Cin, D), lambda n, b: (0, 0)),
            pl.BlockSpec((1, D), lambda n, b: (0, 0)),
            pl.BlockSpec((S, D), lambda n, b: (0, 0)),
        ],
        out_specs=pl.BlockSpec((None, None, S, D), lambda n, b: (n, b, 0, 0)),
        compiler_params=pltpu.CompilerParams(
            dimension_semantics=("parallel", "parallel"),
            vmem_limit_bytes=32 * 1024 * 1024),
    )(feat_stack, wp_bf16, bp, pos)


# ---------------------------------------------------------------------------
# Kernel 2: the whole CrossTransformer stack (all layers), fused over the
# 3 directions and the batch:  grid = (3 directions, B).
#   For each layer: out = LN2( h + FFN(h) ),  h = LN1( q + MHA(q, kv, kv) )
# The per-direction K/V sources are gathered from the projected stack via
# scalar-prefetch index maps; the query state is carried in VMEM across layers.
# ---------------------------------------------------------------------------
_LAYER_KEYS = ("wq", "bq", "wkv", "bkv", "wo", "bo",
               "g1", "be1", "w1", "b1", "w2", "b2", "g2", "be2")
_NW = len(_LAYER_KEYS)

# q @ k^T without materializing k^T (MXU consumes k directly).
_TRANS_B_DIMS = (((1,), (1,)), ((), ()))


def _cross_layers_kernel(n_head, n_layers, eps,
                         others_ref,            # SMEM prefetch (used by index maps)
                         q_ref, kva_ref, kvb_ref,
                         *rest):
    del others_ref
    w_refs = rest[:n_layers * _NW]
    o_ref = rest[n_layers * _NW]
    ctx_ref = rest[n_layers * _NW + 1]

    x = q_ref[...]                                                   # [S, D] f32
    # Fixed key/value sequence for this direction (built once, as in PyTorch).
    kv_bf = jnp.concatenate([kva_ref[...], kvb_ref[...]],
                            axis=0).astype(jnp.bfloat16)             # [2S, D] bf16
    D = x.shape[-1]
    dh = D // n_head

    for li in range(n_layers):
        (wq, bq, wkv, bkv, wo, bo,
         g1, be1, w1, b1, w2, b2, g2, be2) = w_refs[li * _NW:(li + 1) * _NW]

        xb = x.astype(jnp.bfloat16)
        # Q projection (scale already folded into wq/bq) and packed K|V proj.
        q = jnp.dot(xb, wq[...], preferred_element_type=jnp.float32) + bq[...]
        kvp = jnp.dot(kv_bf, wkv[...], preferred_element_type=jnp.float32) + bkv[...]
        k = kvp[:, :D]
        v = kvp[:, D:]

        # Per-head attention (static unroll; contiguous head chunks like
        # nn.MultiheadAttention).  Context written lane-dense into VMEM scratch.
        for hh in range(n_head):
            lo, hi = hh * dh, (hh + 1) * dh
            qh = q[:, lo:hi].astype(jnp.bfloat16)
            kh = k[:, lo:hi].astype(jnp.bfloat16)
            vh = v[:, lo:hi].astype(jnp.bfloat16)
            s = lax.dot_general(qh, kh, _TRANS_B_DIMS,
                                preferred_element_type=jnp.float32)   # [S, 2S]
            s = s - jnp.max(s, axis=-1, keepdims=True)
            p = jnp.exp(s)
            p = p * pl.reciprocal(jnp.sum(p, axis=-1, keepdims=True), approx=True)
            ctx_ref[:, lo:hi] = jnp.dot(p.astype(jnp.bfloat16), vh,
                                        preferred_element_type=jnp.float32)

        attn = jnp.dot(ctx_ref[...].astype(jnp.bfloat16), wo[...],
                       preferred_element_type=jnp.float32) + bo[...]

        # residual + LayerNorm 1 (f32)
        h1 = x + attn
        mu = jnp.mean(h1, axis=-1, keepdims=True)
        var = jnp.mean((h1 - mu) ** 2, axis=-1, keepdims=True)
        h1n = (h1 - mu) * lax.rsqrt(var + eps) * g1[...] + be1[...]

        # FFN (Linear -> ReLU -> Linear) + residual + LayerNorm 2
        hid = jnp.dot(h1n.astype(jnp.bfloat16), w1[...],
                      preferred_element_type=jnp.float32) + b1[...]
        hid = jnp.maximum(hid, 0.0)
        ff = jnp.dot(hid.astype(jnp.bfloat16), w2[...],
                     preferred_element_type=jnp.float32) + b2[...]

        h2 = h1n + ff
        mu2 = jnp.mean(h2, axis=-1, keepdims=True)
        var2 = jnp.mean((h2 - mu2) ** 2, axis=-1, keepdims=True)
        x = (h2 - mu2) * lax.rsqrt(var2 + eps) * g2[...] + be2[...]

    o_ref[...] = x


def cross_transformer_stack(x_stack, prepped, n_head, eps=1e-5):
    """x_stack: [3, B, S, D] projected(+pos) features; prepped: list of layer dicts."""
    N, B, S, D = x_stack.shape
    n_layers = len(prepped)
    weight_args = [pw[k] for pw in prepped for k in _LAYER_KEYS]

    # dir 0 (query=output1) -> cat(x2, x3); dir 1 -> cat(x1, x3); dir 2 -> cat(x1, x2)
    others = jnp.asarray([1, 2, 0, 2, 0, 1], dtype=jnp.int32)   # [dir*2 + slot]

    in_specs = [
        pl.BlockSpec((None, None, S, D), lambda n, b, o: (n, b, 0, 0)),
        pl.BlockSpec((None, None, S, D), lambda n, b, o: (o[n * 2], b, 0, 0)),
        pl.BlockSpec((None, None, S, D), lambda n, b, o: (o[n * 2 + 1], b, 0, 0)),
    ] + [pl.BlockSpec(p.shape, lambda n, b, o: (0, 0)) for p in weight_args]

    return pl.pallas_call(
        partial(_cross_layers_kernel, n_head, n_layers, eps),
        out_shape=jax.ShapeDtypeStruct((N, B, S, D), jnp.float32),
        grid_spec=pltpu.PrefetchScalarGridSpec(
            num_scalar_prefetch=1,
            grid=(N, B),
            in_specs=in_specs,
            out_specs=pl.BlockSpec((None, None, S, D),
                                   lambda n, b, o: (n, b, 0, 0)),
            scratch_shapes=[pltpu.VMEM((S, D), jnp.float32)]),
        compiler_params=pltpu.CompilerParams(
            dimension_semantics=("arbitrary", "parallel"),
            vmem_limit_bytes=32 * 1024 * 1024),
    )(others, x_stack, x_stack, x_stack, *weight_args)


# ---------------------------------------------------------------------------
# Wrapper-side weight prep: fold attention scale into wq/bq, pack K|V weights,
# cast matmul weights to bf16 (biases / LN params stay f32).
# ---------------------------------------------------------------------------
def prep_layer_weights(lp, n_head):
    D = lp["wq"].shape[0]
    scale = 1.0 / math.sqrt(D // n_head)
    return {
        "wq": (lp["wq"] * scale).astype(jnp.bfloat16),
        "bq": lp["bq"] * scale,
        "wkv": jnp.concatenate([lp["wk"], lp["wv"]], axis=1).astype(jnp.bfloat16),
        "bkv": jnp.concatenate([lp["bk"], lp["bv"]], axis=1),
        "wo": lp["wo"].astype(jnp.bfloat16), "bo": lp["bo"],
        "g1": lp["g1"], "be1": lp["be1"],
        "w1": lp["w1"].astype(jnp.bfloat16), "b1": lp["b1"],
        "w2": lp["w2"].astype(jnp.bfloat16), "b2": lp["b2"],
        "g2": lp["g2"], "be2": lp["be2"],
    }


# ---------------------------------------------------------------------------
# Glue: positional embedding, layout plumbing, full forward
# ---------------------------------------------------------------------------
def build_pos_embedding(embed_w, embed_h, h, w):
    # matches: cat([embed_w broadcast over h, embed_h broadcast over w], -1)
    half = embed_w.shape[1]
    ew = jnp.broadcast_to(embed_w[None, :, :], (h, w, half))
    eh = jnp.broadcast_to(embed_h[:, None, :], (h, w, half))
    pos_hwc = jnp.concatenate([ew, eh], axis=-1)        # [h, w, D]
    return pos_hwc.reshape(h * w, -1)                   # [S, D], S = i*w + j


def mccformers_d2_forward(feat1, feat2, feat3, params, h, w, n_head, n_layers):
    # feat*: [B, feature_dim, h, w]  (NCHW, post-backbone)
    B = feat1.shape[0]
    S = h * w
    D = params["wp"].shape[1]

    def to_bsc(x):
        return jnp.transpose(x.reshape(B, x.shape[1], S), (0, 2, 1))

    pos = build_pos_embedding(params["embed_w"], params["embed_h"], h, w)
    feat_stack = jnp.stack([to_bsc(feat1), to_bsc(feat2), to_bsc(feat3)], axis=0)
    x_stack = project_and_add_pos(
        feat_stack, params["wp"].astype(jnp.bfloat16), params["bp"], pos)  # [3,B,S,D]

    prepped = [prep_layer_weights(lp, n_head) for lp in params["layers"]]
    q_stack = cross_transformer_stack(x_stack, prepped, n_head)            # [3,B,S,D]

    # cat([o1, o2, o3], dim=2) in sequence-major [S, B, 3D] layout.
    return jnp.transpose(q_stack, (2, 1, 0, 3)).reshape(S, B, 3 * D)


# ---------------------------------------------------------------------------
# Pure-JAX reference (same math: bf16 matmul operands / f32 accumulation, same
# prepped weights) for a correctness check.
# ---------------------------------------------------------------------------
def _ref_layernorm(x, g, b, eps=1e-5):
    mu = jnp.mean(x, axis=-1, keepdims=True)
    var = jnp.mean((x - mu) ** 2, axis=-1, keepdims=True)
    return (x - mu) * lax.rsqrt(var + eps) * g + b


def _ref_cross_layer(xq, xkv, pw, n_head, eps=1e-5):
    B, S, D = xq.shape
    dh = D // n_head
    xb = xq.astype(jnp.bfloat16)
    yb = xkv.astype(jnp.bfloat16)
    q = jnp.einsum("bsd,de->bse", xb, pw["wq"],
                   preferred_element_type=jnp.float32) + pw["bq"]
    kv = jnp.einsum("bsd,de->bse", yb, pw["wkv"],
                    preferred_element_type=jnp.float32) + pw["bkv"]
    k, v = kv[..., :D], kv[..., D:]
    qh = q.reshape(B, S, n_head, dh).transpose(0, 2, 1, 3)
    kh = k.reshape(B, -1, n_head, dh).transpose(0, 2, 1, 3)
    vh = v.reshape(B, -1, n_head, dh).transpose(0, 2, 1, 3)
    s = jnp.einsum("bhqd,bhkd->bhqk", qh.astype(jnp.bfloat16),
                   kh.astype(jnp.bfloat16), preferred_element_type=jnp.float32)
    a = jax.nn.softmax(s, axis=-1)
    ctx = jnp.einsum("bhqk,bhkd->bhqd", a.astype(jnp.bfloat16),
                     vh.astype(jnp.bfloat16), preferred_element_type=jnp.float32)
    ctx = ctx.transpose(0, 2, 1, 3).reshape(B, S, D)
    attn = jnp.einsum("bsd,de->bse", ctx.astype(jnp.bfloat16), pw["wo"],
                      preferred_element_type=jnp.float32) + pw["bo"]
    h1 = _ref_layernorm(xq + attn, pw["g1"], pw["be1"], eps)
    hid = jax.nn.relu(jnp.einsum("bsd,df->bsf", h1.astype(jnp.bfloat16), pw["w1"],
                                 preferred_element_type=jnp.float32) + pw["b1"])
    ff = jnp.einsum("bsf,fd->bsd", hid.astype(jnp.bfloat16), pw["w2"],
                    preferred_element_type=jnp.float32) + pw["b2"]
    return _ref_layernorm(h1 + ff, pw["g2"], pw["be2"], eps)


def reference_forward(feat1, feat2, feat3, params, h, w, n_head, n_layers):
    B = feat1.shape[0]
    S = h * w

    def to_bsc(x):
        return jnp.transpose(x.reshape(B, x.shape[1], S), (0, 2, 1))

    pos = build_pos_embedding(params["embed_w"], params["embed_h"], h, w)
    wp_b = params["wp"].astype(jnp.bfloat16)

    def proj(x):
        return jnp.einsum("bsc,cd->bsd", to_bsc(x).astype(jnp.bfloat16), wp_b,
                          preferred_element_type=jnp.float32) + params["bp"] + pos

    x1, x2, x3 = proj(feat1), proj(feat2), proj(feat3)
    kv1 = jnp.concatenate([x2, x3], axis=1)
    kv2 = jnp.concatenate([x1, x3], axis=1)
    kv3 = jnp.concatenate([x1, x2], axis=1)

    prepped = [prep_layer_weights(lp, n_head) for lp in params["layers"]]
    o1, o2, o3 = x1, x2, x3
    for li in range(n_layers):
        pw = prepped[li]
        o1, o2, o3 = (_ref_cross_layer(o1, kv1, pw, n_head),
                      _ref_cross_layer(o2, kv2, pw, n_head),
                      _ref_cross_layer(o3, kv3, pw, n_head))
    out = jnp.concatenate([o1, o2, o3], axis=-1)         # [B, S, 3D]
    return jnp.transpose(out, (1, 0, 2))                 # [S, B, 3D]


# ---------------------------------------------------------------------------
# Deterministic parameter init (xavier_uniform_ for >1-D params, small biases,
# LayerNorm gamma=1 / beta=0), mirroring the module's __init__ shapes.
# ---------------------------------------------------------------------------
def init_params(key, feature_dim, d_model, h, w, n_layers):
    keys = iter(jax.random.split(key, 8 + 16 * n_layers))

    def xavier(shape):
        fan_in, fan_out = shape[-2], shape[-1]
        bound = math.sqrt(6.0 / (fan_in + fan_out))
        return jax.random.uniform(next(keys), shape, jnp.float32, -bound, bound)

    def small(shape):
        return 0.02 * jax.random.normal(next(keys), shape, jnp.float32)

    dff = 4 * d_model
    params = {
        "embed_w": xavier((w, d_model // 2)),
        "embed_h": xavier((h, d_model // 2)),
        "wp": xavier((feature_dim, d_model)),            # 1x1 conv weight (Cin, D)
        "bp": small((1, d_model)),
        "layers": [],
    }
    for _ in range(n_layers):
        lp = {
            "wq": xavier((d_model, d_model)), "bq": small((1, d_model)),
            "wk": xavier((d_model, d_model)), "bk": small((1, d_model)),
            "wv": xavier((d_model, d_model)), "bv": small((1, d_model)),
            "wo": xavier((d_model, d_model)), "bo": small((1, d_model)),
            "g1": jnp.ones((1, d_model), jnp.float32),
            "be1": jnp.zeros((1, d_model), jnp.float32),
            "w1": xavier((d_model, dff)), "b1": small((1, dff)),
            "w2": xavier((dff, d_model)), "b2": small((1, d_model)),
            "g2": jnp.ones((1, d_model), jnp.float32),
            "be2": jnp.zeros((1, d_model), jnp.float32),
        }
        params["layers"].append(lp)
    return params


if __name__ == "__main__":
    # d_model chosen as a multiple of 128 so every matmul / store is lane-dense.
    B, feature_dim, h, w = 2, 64, 4, 4
    d_model, n_head, n_layers = 128, 4, 2
    S = h * w

    key = jax.random.PRNGKey(0)
    kp, k1, k2, k3 = jax.random.split(key, 4)
    params = init_params(kp, feature_dim, d_model, h, w, n_layers)

    feat1 = jax.random.normal(k1, (B, feature_dim, h, w), jnp.float32)
    feat2 = jax.random.normal(k2, (B, feature_dim, h, w), jnp.float32)
    feat3 = jax.random.normal(k3, (B, feature_dim, h, w), jnp.float32)

    out = mccformers_d2_forward(feat1, feat2, feat3, params, h, w, n_head, n_layers)
    out = jax.block_until_ready(out)

    assert out.shape == (S, B, 3 * d_model), out.shape
    assert bool(jnp.all(jnp.isfinite(out)))

    ref = reference_forward(feat1, feat2, feat3, params, h, w, n_head, n_layers)
    max_err = float(jnp.max(jnp.abs(out - ref)))
    assert jnp.allclose(out, ref, atol=5e-2, rtol=5e-2), max_err

    print("KERNEL_OK")
</pallas_src>

<mosaic_0001>
module attributes {stable_mosaic.version = 11 : i64} {
  func.func @_proj_pos_kernel(%arg0: i32, %arg1: i32, %arg2: memref<1x1x16x64xf32, #tpu.memory_space<vmem>>, %arg3: memref<64x128xbf16, #tpu.memory_space<vmem>>, %arg4: memref<1x128xf32, #tpu.memory_space<vmem>>, %arg5: memref<16x128xf32, #tpu.memory_space<vmem>>, %arg6: memref<1x1x16x128xf32, #tpu.memory_space<vmem>>) attributes {dimension_semantics = [#tpu.dimension_semantics<parallel>, #tpu.dimension_semantics<parallel>], iteration_bounds = array<i64: 3, 2>, scalar_prefetch = 0 : i64, scratch_operands = 0 : i64, tpu.core_type = #tpu.core_type<tc>, window_params = [{transform_indices = @transform_0, window_bounds = array<i64: 1, 1, 16, 64>}, {pipeline_mode = #tpu.pipeline_mode<synchronous>, transform_indices = @transform_1, window_bounds = array<i64: 64, 128>}, {pipeline_mode = #tpu.pipeline_mode<synchronous>, transform_indices = @transform_2, window_bounds = array<i64: 1, 128>}, {pipeline_mode = #tpu.pipeline_mode<synchronous>, transform_indices = @transform_3, window_bounds = array<i64: 16, 128>}, {transform_indices = @transform_4, window_bounds = array<i64: 1, 1, 16, 128>}]} {
    %c0 = arith.constant 0 : index
    %c0_0 = arith.constant 0 : index
    %c0_1 = arith.constant 0 : index
    %c0_2 = arith.constant 0 : index
    %0 = vector.load %arg2[%c0, %c0_0, %c0_1, %c0_2] : memref<1x1x16x64xf32, #tpu.memory_space<vmem>>, vector<1x1x16x64xf32>
    %1 = vector.shape_cast %0 : vector<1x1x16x64xf32> to vector<16x64xf32>
    %2 = arith.truncf %1 : vector<16x64xf32> to vector<16x64xbf16>
    %c0_3 = arith.constant 0 : index
    %c0_4 = arith.constant 0 : index
    %3 = vector.load %arg3[%c0_3, %c0_4] : memref<64x128xbf16, #tpu.memory_space<vmem>>, vector<64x128xbf16>
    %cst = arith.constant dense<0.000000e+00> : vector<16x128xf32>
    %4 = tpu.matmul %2, %3, %cst {dimension_numbers = #tpu.dot_dimension_numbers<[1], [0], [0], [1], [0, 0, 1, 1], [], []>} : vector<16x64xbf16>, vector<64x128xbf16>, vector<16x128xf32> -> vector<16x128xf32>
    %c0_5 = arith.constant 0 : index
    %c0_6 = arith.constant 0 : index
    %5 = vector.load %arg4[%c0_5, %c0_6] : memref<1x128xf32, #tpu.memory_space<vmem>>, vector<1x128xf32>
    %6 = vector.broadcast %5 : vector<1x128xf32> to vector<16x128xf32>
    %7 = arith.addf %4, %6 : vector<16x128xf32>
    %c0_7 = arith.constant 0 : index
    %c0_8 = arith.constant 0 : index
    %8 = vector.load %arg5[%c0_7, %c0_8] : memref<16x128xf32, #tpu.memory_space<vmem>>, vector<16x128xf32>
    %9 = arith.addf %7, %8 : vector<16x128xf32>
    %c0_9 = arith.constant 0 : index
    %c0_10 = arith.constant 0 : index
    %c0_11 = arith.constant 0 : index
    %c0_12 = arith.constant 0 : index
    %10 = vector.load %arg6[%c0_9, %c0_10, %c0_11, %c0_12] : memref<1x1x16x128xf32, #tpu.memory_space<vmem>>, vector<1x1x16x128xf32>
    %11 = vector.shape_cast %10 : vector<1x1x16x128xf32> to vector<16x128xf32>
    %12 = vector.shape_cast %9 : vector<16x128xf32> to vector<1x1x16x128xf32>
    tpu.vector_store %arg6[%c0_9, %c0_10, %c0_11, %c0_12], %12 {strides = array<i32>} : memref<1x1x16x128xf32, #tpu.memory_space<vmem>>, vector<1x1x16x128xf32>,
    return
  }
  func.func @transform_0(%arg0: i32, %arg1: i32) -> (i32, i32, i32, i32) {
    %c0_i32 = arith.constant 0 : i32
    %c0_i32_0 = arith.constant 0 : i32
    %c0_i32_1 = arith.constant 0 : i32
    return %arg0, %arg1, %c0_i32, %c0_i32_0 : i32, i32, i32, i32
  }
  func.func @transform_1(%arg0: i32, %arg1: i32) -> (i32, i32) {
    %c0_i32 = arith.constant 0 : i32
    %c0_i32_0 = arith.constant 0 : i32
    %c0_i32_1 = arith.constant 0 : i32
    return %c0_i32, %c0_i32_0 : i32, i32
  }
  func.func @transform_2(%arg0: i32, %arg1: i32) -> (i32, i32) {
    %c0_i32 = arith.constant 0 : i32
    %c0_i32_0 = arith.constant 0 : i32
    %c0_i32_1 = arith.constant 0 : i32
    return %c0_i32, %c0_i32_0 : i32, i32
  }
  func.func @transform_3(%arg0: i32, %arg1: i32) -> (i32, i32) {
    %c0_i32 = arith.constant 0 : i32
    %c0_i32_0 = arith.constant 0 : i32
    %c0_i32_1 = arith.constant 0 : i32
    return %c0_i32, %c0_i32_0 : i32, i32
  }
  func.func @transform_4(%arg0: i32, %arg1: i32) -> (i32, i32, i32, i32) {
    %c0_i32 = arith.constant 0 : i32
    %c0_i32_0 = arith.constant 0 : i32
    %c0_i32_1 = arith.constant 0 : i32
    return %arg0, %arg1, %c0_i32, %c0_i32_0 : i32, i32, i32, i32
  }
}

</mosaic_0001>

<bundles_post_ra>
// kernel: tpu_custom_call.1
= control target key start
LH: loop header
LB: loop body
LE: loop exit
PB: predicated region body
PF: predicated region fallthrough
CT: control target
= control target key end

     0   :  { %s1153_s0 = inlined_call_operand.hbm [shape: f32[3,2,16,64], index: 0, kind: input, shape index: {}]   ;;  %s1154_s1 = inlined_call_operand.hbm [shape: bf16[64,128], index: 1, kind: input, shape index: {}]   ;;  %s1155_s2 = inlined_call_operand.vmem [shape: f32[1,128], index: 2, kind: input, shape index: {}]   ;;  %s1156_s3 = inlined_call_operand.hbm [shape: f32[16,128], index: 3, kind: input, shape index: {}]   ;;  %s1157_s4 = inlined_call_operand.hbm [shape: f32[3,2,16,128], index: 4, kind: output, shape index: {}]  }
   0x1   :  { %1168 = sst [smem:[#allocation15_spill]] %s1154_s1 }
   0x2   :  { %1169 = sst [smem:[#allocation16_spill]] %s1156_s3 }
   0x3   :  { %1170 = sst [smem:[#allocation17_spill]] %s1157_s4 }
   0x4   :  { %9 = vsyncpa [#allocation3], 0 }
   0x5   :  { %11 = vsyncpa [#allocation3 + $0x1], 0 }
   0x6   :  { %12 = vsyncpa [#allocation6], 0 }
   0x7   :  { %13 = vsyncpa [#allocation4], 0 }
   0x8   :  { %15 = vsyncpa [#allocation4 + $0x1], 0  ;;  %s864_s15 = smov 0   ;;  %s866_s16 = smov 0  }
   0x9   :  { %s868_s17 = smov 0   ;;  %s870_s18 = smov 0  }
   0xa   :  { %s872_s19 = smov 0   ;;  %s874_s20 = smov 0  }
   0xb   :  { %s876_s21 = smov 0   ;;  %s878_s22 = smov 0  }
   0xc LB: > { %1171 = sst [smem:[#allocation12_spill]] %s797_s15  ;;  %s482_s23 = sadd.s32 4294967295, %s825_s22   ;;  %s825_s22 = sphi %s878_s22, %s21_s22   ;;  %s821_s21 = sphi %s876_s21, %s1202_s21   ;;  %s817_s20 = sphi %s874_s20, %s1201_s20   ;;  %s813_s19 = sphi %s872_s19, %s1200_s19   ;;  %s809_s18 = sphi %s870_s18, %s1199_s18   ;;  %s805_s17 = sphi %s868_s17, %s1198_s17   ;;  %s801_s16 = sphi %s866_s16, %s1197_s16   ;;  %s797_s15 = sphi %s864_s15, %s1196_s15  }
   0xd   : > { %s483_s24 = sadd.s32 4294967294, %s825_s22   ;;  %p55_p0 = scmp.ne.s32.totalorder %s801_s16, %s797_s15 }
   0xe   : > { %p908_p1 = scmp.eq.s32.totalorder %s482_s23, 0  ;;  %p912_p2 = scmp.eq.s32.totalorder %s482_s23, 5 }
   0xf   : > { %p150_p3 = scmp.eq.s32.totalorder %s483_s24, 5  ;;  %p484_p5 = scmp.ge.s32.totalorder %s825_s22, 1 }
  0x10   : > { %s1172_s25 = scalar_select %p908_p1, 1, 0 }
  0x11   : > { %s1173_s26 = scalar_select %p912_p2, 1, 0 }
  0x12   : > { %p918_p4 = por %p908_p1, %p55_p0  ;;  %p923_p6 = por %p150_p3, %p55_p0 }
  0x13   : > { %p157_p7 = scmp.lt.s32.totalorder %s825_s22, 7  ;;  %s827_s30 = smov [#allocation5]  }
  0x14   : > { %s1174_s27 = scalar_select %p918_p4, 1, 0 }
  0x15   : > { %s1175_s28 = scalar_select %p923_p6, 1, 0 }
  0x16   : > { %p928_p8 = pnand %p484_p5, %p157_p7  ;;  %s169_s5 = sshll.u32 %s827_s30, 4  ;;  %s170_s5 = int_to_ptr.vmem [resolvable:$true] %s169_s5 }
  0x17   : > { %1176 = sst [smem:[#allocation13_spill]] %s1175_s28  ;;  %s828_s7 = smov [#allocation7]  }
  0x18   : > { %s1177_s29 = scalar_select %p928_p8, 1, 0 }
  0x19   : > { %p538_p9 = pneg %p928_p8  ;;  %s185_s8 = sshll.u32 %s828_s7, 4  ;;  %s940_s8 = int_to_ptr.vmem [resolvable:$true] %s185_s8 }
  0x1a   : > { %s1179_s1 = sld [smem:[#allocation15_spill]] }
  0x1b   : > { %p936_p10 = pnand %p538_p9, %p908_p1 }
  0x1d   : > { %p639_p12 = pneg %p936_p10 }
  0x20   : > { %s637_s11 = scalar_lea.hbm %s1179_s1, 512 }
  0x21   : > { %p638_p11 = scmp.ne.s32.totalorder %s1179_s1, %s637_s11  ;;  %p644_p3 = scmp.lt.u32.totalorder %s637_s11, %s1179_s1 }
  0x23   : > { %p640_p13 = pnand %p639_p12, %p638_p11 }
  0x25   : > { %p641_p0 = pneg %p640_p13 }
  0x27   : > { %p646_p5 = pnand %p644_p3, %p641_p0 }
  0x29   : > { %649 = shalt.err (!%p646_p5)
}
  0x2a   : > { %s650_s24 = scalar_lea.vmem %s170_s5, 512  ;;  %p658_p1 = scmp.lt.s32.totalorder %s170_s5, %s170_s5 }
  0x2b   : > { %p651_p7 = scmp.ne.s32.totalorder %s170_s5, %s650_s24  ;;  %p659_p4 = scmp.lt.s32.totalorder %s650_s24, %s650_s24 }
  0x2d   : > { %p653_p9 = pnand %p651_p7, %p639_p12  ;;  %p660_p8 = por %p659_p4, %p658_p1 }
  0x2f   : > { %p654_p6 = pneg %p653_p9 }
  0x31   : > { %p661_p2 = pnand %p660_p8, %p654_p6 }
  0x33   : > { %664 = shalt.err (!%p661_p2)
}
  0x34   : > { %s829_s30 = smov 64   ;;  %s830_s7 = smov 4  }
  0x35   : > { %541 = dma.hbm_to_vmem [thread:$0]  (!%p936_p10), %s1179_s1, 512, %s170_s5, [#allocation6], %s829_s30, %s829_s30, %s830_s7  }
  0x36   : > { %s1180_s3 = sld [smem:[#allocation16_spill]] }
  0x3c   : > { %s665_s13 = scalar_lea.hbm %s1180_s3, 256 }
  0x3d   : > { %p666_p11 = scmp.ne.s32.totalorder %s1180_s3, %s665_s13  ;;  %p672_p4 = scmp.lt.u32.totalorder %s665_s13, %s1180_s3 }
  0x3f   : > { %p668_p1 = pnand %p666_p11, %p639_p12 }
  0x41   : > { %p669_p2 = pneg %p668_p1 }
  0x43   : > { %p674_p6 = pnand %p672_p4, %p669_p2 }
  0x45   : > { %677 = shalt.err (!%p674_p6)
}
  0x46   : > { %s678_s5 = scalar_lea.vmem %s940_s8, 256  ;;  %p686_p3 = scmp.lt.s32.totalorder %s940_s8, %s940_s8 }
  0x47   : > { %p679_p8 = scmp.ne.s32.totalorder %s940_s8, %s678_s5  ;;  %p687_p5 = scmp.lt.s32.totalorder %s678_s5, %s678_s5 }
  0x49   : > { %p681_p13 = pnand %p679_p8, %p639_p12  ;;  %p688_p7 = por %p687_p5, %p686_p3 }
  0x4b   : > { %p682_p0 = pneg %p681_p13 }
  0x4d   : > { %p689_p9 = pnand %p688_p7, %p682_p0 }
  0x4f   : > { %692 = shalt.err (!%p689_p9)
}
  0x50   : > { %s1163_s28 = smov 128   ;;  %s1164_s30 = smov 8  }
  0x51   : > { %544 = dma.hbm_to_vmem [thread:$0]  (!%p936_p10), %s1180_s3, 256, %s940_s8, [#allocation6], %s1163_s28, %s1163_s28, %s1164_s30  }
  0x52   : > { %s30_s10 = sadd.s32 1, %s817_s20  ;;  %s33_s11 = sadd.s32 1, %s821_s21 }
  0x53   : > { %p31_p12 = scmp.ge.s32.totalorder %s30_s10, 2  ;;  %s42_s12 = sadd.s32 1, %s805_s17 }
  0x54   : > { %p49_p11 = scmp.ne.s32.totalorder %s805_s17, %s801_s16  ;;  %p50_p1 = scmp.eq.s32.totalorder %s825_s22, 0 }
  0x55   : > { %s1204_s10 = smov (%p31_p12, %s30_s10), 0  ;;  %s1206_s11 = smov (!%p31_p12, %s33_s11), %s821_s21 }
  0x56   : > { %1181 = sst [smem:[#allocation14_spill]] %s1204_s10  ;;  %s38_s6 = ssub.s32 %s817_s20, %s1204_s10 }
  0x57   : > { %p1003_p2 = por %p50_p1, %p49_p11  ;;  %p35_p10 = scmp.ge.s32.totalorder %s1206_s11, 3 }
  0x58   : > { %p1183_p4 = scmp.ne.s32.totalorder %s1173_s26, 0  ;;  %p555_p8 = scmp.lt.s32.totalorder %s825_s22, 6 }
  0x59   : > { %s199_s14 = sand.u32 1, %s805_s17   ;;  %s1208_s11 = smov (%p35_p10, %s1206_s11), 0 }
  0x5a   : > { %p1009_p6 = por %p1183_p4, %p49_p11  ;;  %s488_s23 = sshll.u32 %s199_s14, 4 }
  0x5b   : > { %s37_s24 = ssub.s32 %s821_s21, %s1208_s11  ;;  %s489_s7 = sshll.u32 %s817_s20, 1 }
  0x5c   : > { %s39_s5 = sor.u32 %s38_s6, %s37_s24  ;;  %s490_s9 = sshll.u32 %s821_s21, 2 }
  0x5d   : > { %p40_p13 = scmp.eq.s32.totalorder %s39_s5, 0  ;;  %s209_s28 = sadd.s32 %s490_s9, %s489_s7 }
  0x5e   : > { %s203_s30 = scalar_lea.vmem [#allocation2], %s488_s23  ;;  %s491_s3 = sshll.u32 %s209_s28, 7 }
  0x5f   : > { %s212_s26 = sshll.u32 %s203_s30, 4  ;;  %s1029_s4 = scalar_lea.hbm %s1153_s0, %s491_s3  ;;  %s1024_s26 = int_to_ptr.vmem [resolvable:$true] %s212_s26 }
  0x60   : > { %s1022_s1 = scalar_select %p40_p13, %s805_s17, %s42_s12  }
  0x61   : > { %p1035_p0 = pnand %p555_p8, %p1003_p2  ;;  %s1039_s28 = scalar_lea.sflag [#allocation3], %s199_s14 }
  0x62   : > { %s693_s30 = scalar_lea.hbm %s1029_s4, 256  ;;  %s698_s10 = scalar_lea.hbm %s1153_s0, 1536 }
  0x63   : > { %p694_p3 = scmp.ne.s32.totalorder %s1029_s4, %s693_s30  ;;  %p695_p5 = pneg %p1035_p0 }
  0x64   : > { %p699_p12 = scmp.lt.u32.totalorder %s1029_s4, %s1153_s0  ;;  %p700_p11 = scmp.lt.u32.totalorder %s698_s10, %s693_s30 }
  0x65   : > { %p696_p7 = pnand %p695_p5, %p694_p3  ;;  %p702_p2 = scmp.lt.u32.totalorder %s693_s30, %s1029_s4 }
  0x66   : > { %p701_p1 = por %p700_p11, %p699_p12 }
  0x67   : > { %p697_p9 = pneg %p696_p7 }
  0x68   : > { %p703_p10 = por %p702_p2, %p701_p1 }
  0x6a   : > { %p704_p4 = pnand %p703_p10, %p697_p9 }
  0x6c   : > { %707 = shalt.err (!%p704_p4)
}
  0x6d   : > { %s708_s14 = scalar_lea.vmem %s1024_s26, 256  ;;  %s833_s23 = smov [#allocation2]  }
  0x6e   : > { %p709_p8 = scmp.ne.s32.totalorder %s1024_s26, %s708_s14  ;;  %s713_s24 = sshll.u32 %s833_s23, 4  ;;  %s714_s24 = int_to_ptr.vmem [resolvable:$false] %s713_s24 }
  0x6f   : > { %s715_s5 = scalar_lea.vmem %s714_s24, 512  ;;  %p716_p7 = scmp.lt.s32.totalorder %s1024_s26, %s714_s24 }
  0x70   : > { %p711_p13 = pnand %p709_p8, %p695_p5  ;;  %p717_p12 = scmp.lt.s32.totalorder %s715_s5, %s708_s14 }
  0x72   : > { %p712_p3 = pneg %p711_p13  ;;  %p718_p11 = por %p717_p12, %p716_p7 }
  0x74   : > { %p719_p1 = pnand %p718_p11, %p712_p3 }
  0x76   : > { %722 = shalt.err (!%p719_p1)
}
  0x77   : > { %s1186_s7 = smov 8   ;;  %s1187_s9 = smov 128  }
  0x78   : > { %548 = dma.hbm_to_vmem [thread:$0]  (!%p1035_p0), %s1029_s4, 256, %s1024_s26, %s1039_s28, %s1187_s9, %s1187_s9, %s1186_s7  }
  0x79   : > { %p1188_p5 = scmp.ne.s32.totalorder %s1177_s29, 0 }
  0x7a   : > { %s1073_s30 = sand.u32 (!%p1188_p5), 1, %s801_s16   ;;  %p1189_p9 = scmp.ne.s32.totalorder (!%p1188_p5), %s1174_s27, 0 }
  0x7b   : > { %224 = sbr.rel (%p1188_p5) target bundleno = 384 (0x180), region = 36  ;;  %s493_s3 = sshll.u32 (!%p1188_p5), %s1073_s30, 4 }
  0x7c   : > { %s227_s15 = scalar_lea.sflag (!%p1188_p5), [#allocation3], %s1073_s30  ;;  %s230_s6 = scalar_lea.vmem (!%p1188_p5), [#allocation2], %s493_s3 }
  0x82   : > { %784 = dma.done.wait (%p1189_p9), %s227_s15, 256  }
  0x83   : > { %786 = vsyncadd (%p1189_p9), %s227_s15, 4294967040  ;;  %p1190_p0 = scmp.ne.s32.totalorder %s1172_s25, 0 }
  0x85   : > { %788 = dma.done.wait (%p1190_p0), [#allocation6], 768  }
  0x86   : > { %790 = vsyncadd (%p1190_p0), [#allocation6], 4294966528  ;;  %v834_v0 = vmov 0.0   ;;  %vm835_vm0 = vmmov 0   ;;  %v633_v1 = vld [vmem:[#allocation5] sm:$0xff]   ;;  %v634_v2 = vld [vmem:[#allocation5 + $0x8] sm:$0xff]  }
  0x87   : > { %514 = vmatprep.subr.bf16.mxu0 %v834_v0  ;;  %522 = vmatprep.mubr.msk.bf16.mxu0 %vm835_vm0, %v834_v0  ;;  %v635_v3 = vld [vmem:[#allocation5 + $0x10] sm:$0xff]   ;;  %v636_v4 = vld [vmem:[#allocation5 + $0x18] sm:$0xff]   ;;  %vm306_vm1 = vcmask 523264   ;;  %s504_s4 = sshll.u32 %s809_s18, 1  ;;  %s505_s25 = sshll.u32 %s813_s19, 2  ;;  %v351_v10 = vld [vmem:[#allocation7] sm:$0xff] }
  0x88   : > { %515 = vmatpush3.bf16.msra.mxu0 %v633_v1  ;;  %v264_v5 = vld [vmem:[%s230_s6] sm:$0xff]  ;;  %v265_v6 = vld [vmem:[%s230_s6 + $0x8] sm:$0xff]  ;;  %s370_s26 = sadd.s32 %s505_s25, %s504_s4  ;;  %s262_s28 = scalar_lea.vmem [#allocation8], %s493_s3 }
  0x89   : > { %516 = vmatprep.subr.bf16.mxu0 %v834_v0  ;;  %v266_v7 = vpack.c.bf16 %v265_v6, %v264_v5  ;;  %v497_v8 = vld [vmem:[%s1155_s2] ss:$0 sm:$0xff]  ;;  %s373_s10 = sshll.u32 %s262_s28, 4  ;;  %s506_s12 = sshll.u32 %s370_s26, 7  ;;  %v352_v14 = vld [vmem:[#allocation7 + $0x8] sm:$0xff]  ;;  %s1094_s10 = int_to_ptr.vmem [resolvable:$true] %s373_s10 }
  0x8a   : > { %s1191_s13 = sld [smem:[#allocation17_spill]]  ;;  %s358_s23 = scalar_lea.sflag [#allocation4], %s1073_s30 }
  0x8b   : > { %s723_s24 = scalar_lea.vmem %s1094_s10, 256  ;;  %s836_s5 = smov [#allocation8]  }
  0x8c   : > { %517 = vmatpush3.bf16.msra.mxu0 %v634_v2  ;;  %p724_p2 = scmp.ne.s32.totalorder %s1094_s10, %s723_s24  ;;  %s727_s7 = sshll.u32 %s836_s5, 4  ;;  %s728_s7 = int_to_ptr.vmem [resolvable:$false] %s727_s7 }
  0x8d   : > { %518 = vmatprep.subr.bf16.mxu0 %v834_v0  ;;  %s729_s9 = scalar_lea.vmem %s728_s7, 512  ;;  %p730_p8 = scmp.lt.s32.totalorder %s1094_s10, %s728_s7 }
  0x8e   : > { %p725_p10 = pnand %p724_p2, %p1009_p6  ;;  %p731_p13 = scmp.lt.s32.totalorder %s729_s9, %s723_s24 }
  0x90   : > { %519 = vmatpush3.bf16.msra.mxu0 %v635_v3  ;;  %s1099_s14 = scalar_lea.hbm %s1191_s13, %s506_s12  ;;  %p726_p4 = pneg %p725_p10 }
  0x91   : > { %520 = vmatprep.subr.bf16.mxu0 %v834_v0  ;;  %p732_p3 = por %p731_p13, %p730_p8 }
  0x93   : > { %p733_p7 = pnand %p732_p3, %p726_p4 }
  0x94   : > { %521 = vmatpush3.bf16.msra.mxu0 %v636_v4 }
  0x97   : > { %523 = vmatmul.mubr.msk.bf16.vlgmr.msra.gmra.mrb[0].mxu0 %vm306_vm1, %v266_v7 }
 0x16a   : > { %v344_v9 = vpop.f32.mrb[0].mxu0 }
 0x16b   : > { %v345_v11 = vadd.f32 %v497_v8, %v344_v9  ;;  %v524_v12 = vpop.f32.mrb[1].mxu0 }
 0x16c   : > { %v347_v13 = vpop.f32.mrb[2].mxu0 }
 0x16d   : > { %v353_v15 = vadd.f32 %v351_v10, %v345_v11  ;;  %v348_v16 = vadd.f32 %v497_v8, %v347_v13  ;;  %v525_v17 = vpop.f32.mrb[3].mxu0 }
 0x16f   : > { %355 = vst [vmem:[%s262_s28] sm:$0xff] %v353_v15  ;;  %v354_v18 = vadd.f32 %v352_v14, %v348_v16 }
 0x171   : > { %356 = vst [vmem:[%s262_s28 + $0x8] sm:$0xff] %v354_v18 }
 0x172   : > { %736 = shalt.err (!%p733_p7)
}
 0x173   : > { %s737_s3 = scalar_lea.hbm %s1099_s14, 256  ;;  %s741_s4 = scalar_lea.hbm %s1191_s13, 1536 }
 0x174   : > { %p738_p12 = scmp.ne.s32.totalorder %s1099_s14, %s737_s3  ;;  %p742_p5 = scmp.lt.u32.totalorder %s1099_s14, %s1191_s13 }
 0x175   : > { %p743_p9 = scmp.lt.u32.totalorder %s741_s4, %s737_s3  ;;  %p745_p2 = scmp.lt.u32.totalorder %s737_s3, %s1099_s14 }
 0x176   : > { %p739_p11 = pnand %p738_p12, %p1009_p6 }
 0x177   : > { %p744_p0 = por %p743_p9, %p742_p5 }
 0x178   : > { %p740_p1 = pneg %p739_p11 }
 0x179   : > { %p746_p10 = por %p745_p2, %p744_p0 }
 0x17b   : > { %p747_p4 = pnand %p746_p10, %p740_p1 }
 0x17d   : > { %750 = shalt.err (!%p747_p4)
}
 0x17e   : > { %s837_s29 = smov 128   ;;  %s838_s26 = smov 8  }
 0x17f   : > { %536 = dma.vmem_to_hbm [thread:$0]  (%p1009_p6), %s1094_s10, 256, %s1099_s14, %s358_s23, %s837_s29, %s837_s29, %s838_s26  }
 0x180 PF: > { %s1192_s28 = sld [smem:[#allocation12_spill]]  ;;  %s1193_s12 = sld [smem:[#allocation13_spill]] }
 0x181   : > { %p558_p8 = scmp.ge.s32.totalorder %s825_s22, 2 }
 0x186   : > { %s388_s18 = sand.u32 1, %s1192_s28   ;;  %p1194_p13 = scmp.ne.s32.totalorder %s1193_s12, 0 }
 0x187   : > { %s389_s19 = scalar_lea.sflag [#allocation4], %s388_s18 }
 0x188   : > { %p550_p3 = pnand %p558_p8, %p1194_p13 }
 0x18a   : > { %792 = dma.done.wait (!%p550_p3), %s389_s19, 256  }
 0x18b   : > { %794 = vsyncadd (!%p550_p3), %s389_s19, 4294967040  ;;  %s21_s22 = sadd.s32 1, %s825_s22   ;;  %s1195_s8 = sld [smem:[#allocation14_spill]] }
 0x18c   : > { %p18_p7 = scmp.ge.s32.totalorder %s21_s22, 8   ;;  %s1196_s15 = smov %s801_s16 }
 0x18d   : > { %s1197_s16 = smov %s805_s17  ;;  %s1198_s17 = smov %s1022_s1 }
 0x18e   : > { %s1199_s18 = smov %s817_s20  ;;  %s1200_s19 = smov %s821_s21 }
 0x18f   : > { %s1202_s21 = smov %s1208_s11  ;;  %20 = sbr.rel (!%p18_p7) target bundleno = 12 (0xc), region = 89 }
 0x191   : > { %s1201_s20 = smov %s1195_s8 }
 0x196   :  { %394 = vsyncpa [#allocation3], 1 }
 0x197   :  { %396 = vsyncpa [#allocation3 + $0x1], 1 }
 0x198   :  { %397 = vsyncpa [#allocation6], 1 }
 0x199   :  { %398 = vsyncpa [#allocation4], 1 }
 0x19a   :  { %400 = vsyncpa [#allocation4 + $0x1], 1 }

</bundles_post_ra>
